<compile_context>
chip_gen: v7x
topology: tpu7x:2x2x1
jax: 0.10.0
libtpu: 0.0.40
codegen_flags: <defaults>
</compile_context>

<pallas_src>
import functools

import jax
import jax.numpy as jnp
import numpy as np
from jax.experimental import pallas as pl
from jax.experimental.pallas import tpu as pltpu

_LANES = 128
_SUBLANES = 8

_PENALTY_3x3 = np.array([[0.0, 1.0, 2.0],
                         [5.0, 0.0, 1.0],
                         [20.0, 10.0, 0.0]], dtype=np.float32)


def _round_up(x, m):
    return (x + m - 1) // m * m


def _ceil_div(a, b):
    return -(-a // b)


def _clinical_safety_loss_kernel(logits_ref, targets_ref, out_ref, acc_ref, *,
                                 num_classes, pmat, weights):
    """One batch tile.

    logits_ref : (C, Rt, 128) f32   -- classes on the leading (tiny) axis
    targets_ref: (Rt, 128)    i32   -- padded columns carry target = -1 (inert)
    out_ref    : (1, 8)       f32   -- SMEM partial sums for this parallel slice
    acc_ref    : (5, 8, 128)  f32   -- VMEM vector accumulators (per core)
    """
    t_step = pl.program_id(1)

    @pl.when(t_step == 0)
    def _init():
        acc_ref[...] = jnp.zeros_like(acc_ref)

    C = num_classes
    kmax = min(C, 3)
    t = targets_ref[...]                          # (Rt, 128) i32

    # Per-class lane-dense rows (Rt, 128); the tiny class axis is unrolled.
    rows = [logits_ref[a] for a in range(C)]

    # ---- class-axis max (reused for log-softmax shift and argmax) ----
    m = rows[0]
    for a in range(1, C):
        m = jnp.maximum(m, rows[a])

    # ---- log-sum-exp over classes (VPU adds + EUP exp/log) ----
    s = jnp.exp(rows[0] - m)
    for a in range(1, C):
        s = s + jnp.exp(rows[a] - m)
    lse = jnp.log(s)                              # (Rt, 128)

    # ---- argmax as per-class one-hot booleans (first-index tie-break, only
    #      classes < 3 are ever needed downstream) ----
    eq = [rows[a] == m for a in range(kmax)]
    pred_eq = []
    seen = None
    for a in range(kmax):
        if seen is None:
            pred_eq.append(eq[a])
            seen = eq[a]
        else:
            pred_eq.append(eq[a] & jnp.logical_not(seen))
            seen = seen | eq[a]

    # ---- target one-hot compares, shared by gather / weights / penalty ----
    t_eq = [t == a for a in range(C)]

    zero = jnp.zeros_like(m)
    sel = zero
    for a in range(C):
        sel = jnp.where(t_eq[a], rows[a], sel)
    nll = m + lse - sel                           # junk on padded cols, masked below

    if weights is None:
        # Single valid-mask compare; denominator is the static batch size.
        nll_c = jnp.where(t >= 0, nll, zero)
        wt = None
    else:
        wt = zero
        for a in range(C):
            wt = jnp.where(t_eq[a], jnp.float32(float(weights[a])), wt)
        nll_c = nll * wt                          # wt == 0 on padded columns

    # ---- safety penalty: nonzero (t==a)&(pred==b) terms with baked coefficients ----
    pen = zero
    for a in range(kmax):
        for b in range(kmax):
            coef = float(pmat[a][b])
            if coef != 0.0:
                pen = pen + jnp.where(t_eq[a] & pred_eq[b], jnp.float32(coef), 0.0)

    # ---- critical-miss statistics (class 2) ----
    if C >= 3:
        crit = jnp.where(t_eq[2], jnp.float32(1.0), jnp.float32(0.0))
        miss = jnp.where(t_eq[2] & jnp.logical_not(pred_eq[2]),
                         jnp.float32(1.0), jnp.float32(0.0))
    else:
        crit = None
        miss = None

    # ---- VPU-only accumulation: reduce (Rt,128) -> (8,128) along the vreg axis ----
    def _acc(k, x):
        acc_ref[k] = acc_ref[k] + jnp.sum(
            x.reshape(-1, _SUBLANES, _LANES), axis=0)

    _acc(0, nll_c)                                # weighted/masked NLL numerator
    if wt is not None:
        _acc(1, wt)                               # weight denominator
    _acc(2, pen)                                  # safety penalty sum
    if crit is not None:
        _acc(3, crit)                             # number of critical targets
        _acc(4, miss)                             # critical misses

    # ---- finalize this parallel slice: cross-lane reductions once, to SMEM ----
    @pl.when(t_step == pl.num_programs(1) - 1)
    def _finalize():
        for k in range(5):
            out_ref[0, k] = jnp.sum(acc_ref[k])
        for k in range(5, 8):
            out_ref[0, k] = jnp.float32(0.0)


def clinical_safety_loss(outputs, targets, class_weights=None,
                         under_triage_penalty=10.0,   # unused in forward (parity with torch)
                         critical_miss_penalty=20.0,
                         block_b=262144):
    """outputs: (B, C) float logits, targets: (B,) int labels. Returns scalar f32."""
    outputs = jnp.asarray(outputs, dtype=jnp.float32)
    B, C = outputs.shape

    min_tile = _SUBLANES * _LANES                             # 1024 samples
    bytes_per_sample = (C + 1) * 4                            # f32 logits + i32 target
    # Cap tile so the double-buffered footprint stays <= ~32 MiB (v7x-safe).
    tile_cap = max(min_tile,
                   ((32 << 20) // (2 * bytes_per_sample)) // min_tile * min_tile)
    block_b = int(min(max(int(block_b), min_tile), tile_cap))
    block_b = _round_up(block_b, min_tile)

    # Balanced tiling: choose tile count first, then size tiles to cover B with
    # < min_tile padding waste per tile.  Even tile count enables a 2-way
    # "parallel" split across TensorCores (v7x); it is a no-op loop on 1-TC chips.
    n_tiles = max(1, _ceil_div(B, block_b))
    if n_tiles > 1 and n_tiles % 2:
        n_tiles += 1
    tile_b = _round_up(_ceil_div(B, n_tiles), min_tile)
    padded_b = tile_b * n_tiles
    pad = padded_b - B

    n_par = 2 if (n_tiles >= 2 and n_tiles % 2 == 0) else 1
    tiles_per_par = n_tiles // n_par
    rows_total = padded_b // _LANES
    rows_per_tile = tile_b // _LANES

    # ---- single staging copy: pad + transpose + reshape to lane-dense slabs ----
    # TODO(synk): if the producer can emit (C, B) logits directly (e.g. classifier
    # matmul output layout), this transpose copy disappears entirely (biggest win
    # on HBM-bound v5e).
    t_i32 = jnp.asarray(targets, dtype=jnp.int32)
    if pad:
        logits_p = jnp.pad(outputs, ((0, pad), (0, 0)))               # zeros: inert
        targets_p = jnp.pad(t_i32, (0, pad), constant_values=-1)      # -1: matches no class
    else:
        logits_p = outputs
        targets_p = t_i32
    logits3 = logits_p.T.reshape(C, rows_total, _LANES)               # (C, R, 128)
    targets3 = targets_p.reshape(rows_total, _LANES)                  # (R, 128)

    # ---- compile-time constants: penalty matrix (zero-padded/truncated) & weights ----
    k = min(C, 3)
    pmat = np.zeros((3, 3), dtype=np.float32)
    pmat[:k, :k] = _PENALTY_3x3[:k, :k]
    pmat_const = tuple(tuple(float(v) for v in r) for r in pmat)
    if class_weights is None:
        weights_const = None
    else:
        # Must be concrete host values (fixed at module construction in PyTorch).
        weights_const = tuple(float(x) for x in np.asarray(class_weights).reshape(-1))

    kernel = functools.partial(
        _clinical_safety_loss_kernel,
        num_classes=C,
        pmat=pmat_const,
        weights=weights_const,
    )

    # 2x (logits block + targets block) double-buffered + slack for scratch/internal.
    vmem_limit = int(2 * bytes_per_sample * tile_b + (8 << 20))

    partials = pl.pallas_call(
        kernel,
        out_shape=jax.ShapeDtypeStruct((n_par, 8), jnp.float32),
        grid=(n_par, tiles_per_par),
        in_specs=[
            pl.BlockSpec((C, rows_per_tile, _LANES),
                         lambda p, t: (0, p * tiles_per_par + t, 0)),
            pl.BlockSpec((rows_per_tile, _LANES),
                         lambda p, t: (p * tiles_per_par + t, 0)),
        ],
        out_specs=pl.BlockSpec((1, 8), lambda p, t: (p, 0),
                               memory_space=pltpu.MemorySpace.SMEM),
        scratch_shapes=[pltpu.VMEM((5, _SUBLANES, _LANES), jnp.float32)],
        compiler_params=pltpu.CompilerParams(
            dimension_semantics=("parallel", "arbitrary"),
            vmem_limit_bytes=vmem_limit),
    )(logits3, targets3)

    # ---- tiny final combine in plain JAX (handles the per-core partial rows) ----
    sums = jnp.sum(partials, axis=0)                                  # (8,)
    wnum, wden = sums[0], sums[1]
    pen_sum, n_crit, misses = sums[2], sums[3], sums[4]
    if class_weights is None:
        ce = wnum / jnp.float32(B)
    else:
        ce = wnum / wden
    safety = pen_sum / jnp.float32(B)
    crit_pen = jnp.where(
        n_crit > 0.0,
        misses / jnp.maximum(n_crit, 1.0) * jnp.float32(critical_miss_penalty),
        jnp.float32(0.0),
    )
    return ce + 0.3 * safety + 0.5 * crit_pen


def _reference(outputs, targets, class_weights=None, critical_miss_penalty=20.0):
    """Pure-JAX reference mirroring the PyTorch forward."""
    logp = jax.nn.log_softmax(outputs, axis=1)
    nll = -jnp.take_along_axis(logp, targets[:, None], axis=1)[:, 0]
    if class_weights is None:
        ce = jnp.mean(nll)
    else:
        w = jnp.asarray(class_weights, dtype=jnp.float32)[targets]
        ce = jnp.sum(nll * w) / jnp.sum(w)
    pred = jnp.argmax(outputs, axis=1)
    pmat = jnp.asarray(_PENALTY_3x3)
    safety = jnp.mean(pmat[targets, pred])
    crit = targets == 2
    n_crit = jnp.sum(crit)
    misses = jnp.sum(crit & (pred != 2)).astype(jnp.float32)
    crit_pen = jnp.where(n_crit > 0,
                         misses / jnp.maximum(n_crit, 1).astype(jnp.float32)
                         * critical_miss_penalty, 0.0)
    return ce + 0.3 * safety + 0.5 * crit_pen


if __name__ == "__main__":
    key = jax.random.PRNGKey(0)
    k1, k2, k3, k4 = jax.random.split(key, 4)

    # Small shapes consistent with the module: 3 triage classes.
    B, C = 8, 3
    outputs = jax.random.normal(k1, (B, C), dtype=jnp.float32)
    targets = jax.random.randint(k2, (B,), 0, C, dtype=jnp.int32)

    loss = jax.block_until_ready(clinical_safety_loss(outputs, targets))
    ref = jax.block_until_ready(_reference(outputs, targets))
    np.testing.assert_allclose(np.asarray(loss), np.asarray(ref), rtol=1e-5, atol=1e-5)

    # Exercise the multi-tile grid (balanced tiling, padding, 2-way parallel
    # split, VMEM vector accumulation) and the class-weighted CE branch.
    B2 = 2500
    outputs2 = jax.random.normal(k3, (B2, C), dtype=jnp.float32)
    targets2 = jax.random.randint(k4, (B2,), 0, C, dtype=jnp.int32)
    cw = [1.0, 2.0, 4.0]
    loss2 = jax.block_until_ready(
        clinical_safety_loss(outputs2, targets2, class_weights=cw, block_b=1024))
    ref2 = jax.block_until_ready(_reference(outputs2, targets2, class_weights=cw))
    np.testing.assert_allclose(np.asarray(loss2), np.asarray(ref2), rtol=1e-4, atol=1e-4)

    print("KERNEL_OK")
</pallas_src>

<mosaic_0001>
module attributes {stable_mosaic.version = 11 : i64} {
  func.func @_clinical_safety_loss_kernel(%arg0: i32, %arg1: i32, %arg2: memref<3x8x128xf32, #tpu.memory_space<vmem>>, %arg3: memref<8x128xi32, #tpu.memory_space<vmem>>, %arg4: memref<1x8xf32, #tpu.memory_space<smem>>, %arg5: memref<5x8x128xf32, #tpu.memory_space<vmem>>) attributes {dimension_semantics = [#tpu.dimension_semantics<parallel>, #tpu.dimension_semantics<arbitrary>], iteration_bounds = array<i64: 1, 1>, scalar_prefetch = 0 : i64, scratch_operands = 1 : i64, tpu.core_type = #tpu.core_type<tc>, window_params = [{transform_indices = @transform_0, window_bounds = array<i64: 3, 8, 128>}, {transform_indices = @transform_1, window_bounds = array<i64: 8, 128>}, {transform_indices = @transform_2, window_bounds = array<i64: 1, 8>}]} {
    %c0_i32 = arith.constant 0 : i32
    %0 = arith.cmpi eq, %arg1, %c0_i32 : i32
    %1 = arith.extui %0 : i1 to i32
    %c0_i32_0 = arith.constant 0 : i32
    %2 = arith.cmpi ne, %1, %c0_i32_0 : i32
    scf.if %2 {
      %cst_58 = arith.constant 0.000000e+00 : f32
      %117 = vector.broadcast %cst_58 : f32 to vector<5x8x128xf32>
      %c0_59 = arith.constant 0 : index
      %c0_60 = arith.constant 0 : index
      %c0_61 = arith.constant 0 : index
      %118 = vector.load %arg5[%c0_59, %c0_60, %c0_61] : memref<5x8x128xf32, #tpu.memory_space<vmem>>, vector<5x8x128xf32>
      tpu.vector_store %arg5[%c0_59, %c0_60, %c0_61], %117 {strides = array<i32>} : memref<5x8x128xf32, #tpu.memory_space<vmem>>, vector<5x8x128xf32>,
    } else {
    }
    %c0 = arith.constant 0 : index
    %c0_1 = arith.constant 0 : index
    %3 = vector.load %arg3[%c0, %c0_1] : memref<8x128xi32, #tpu.memory_space<vmem>>, vector<8x128xi32>
    %c0_2 = arith.constant 0 : index
    %c0_3 = arith.constant 0 : index
    %c0_4 = arith.constant 0 : index
    %4 = vector.load %arg2[%c0_2, %c0_3, %c0_4] : memref<3x8x128xf32, #tpu.memory_space<vmem>>, vector<1x8x128xf32>
    %5 = vector.shape_cast %4 : vector<1x8x128xf32> to vector<8x128xf32>
    %c1 = arith.constant 1 : index
    %c0_5 = arith.constant 0 : index
    %c0_6 = arith.constant 0 : index
    %6 = vector.load %arg2[%c1, %c0_5, %c0_6] : memref<3x8x128xf32, #tpu.memory_space<vmem>>, vector<1x8x128xf32>
    %7 = vector.shape_cast %6 : vector<1x8x128xf32> to vector<8x128xf32>
    %c2 = arith.constant 2 : index
    %c0_7 = arith.constant 0 : index
    %c0_8 = arith.constant 0 : index
    %8 = vector.load %arg2[%c2, %c0_7, %c0_8] : memref<3x8x128xf32, #tpu.memory_space<vmem>>, vector<1x8x128xf32>
    %9 = vector.shape_cast %8 : vector<1x8x128xf32> to vector<8x128xf32>
    %10 = arith.maximumf %5, %7 : vector<8x128xf32>
    %11 = arith.maximumf %10, %9 : vector<8x128xf32>
    %12 = arith.subf %5, %11 : vector<8x128xf32>
    %13 = math.exp %12 : vector<8x128xf32>
    %14 = arith.subf %7, %11 : vector<8x128xf32>
    %15 = math.exp %14 : vector<8x128xf32>
    %16 = arith.addf %13, %15 : vector<8x128xf32>
    %17 = arith.subf %9, %11 : vector<8x128xf32>
    %18 = math.exp %17 : vector<8x128xf32>
    %19 = arith.addf %16, %18 : vector<8x128xf32>
    %20 = math.log %19 : vector<8x128xf32>
    %21 = arith.cmpf oeq, %5, %11 : vector<8x128xf32>
    %22 = arith.cmpf oeq, %7, %11 : vector<8x128xf32>
    %23 = arith.cmpf oeq, %9, %11 : vector<8x128xf32>
    %cst = arith.constant dense<true> : vector<8x128xi1>
    %24 = arith.xori %21, %cst : vector<8x128xi1>
    %25 = arith.andi %22, %24 : vector<8x128xi1>
    %26 = arith.ori %21, %22 : vector<8x128xi1>
    %cst_9 = arith.constant dense<true> : vector<8x128xi1>
    %27 = arith.xori %26, %cst_9 : vector<8x128xi1>
    %28 = arith.andi %23, %27 : vector<8x128xi1>
    %c0_i32_10 = arith.constant 0 : i32
    %29 = vector.broadcast %c0_i32_10 : i32 to vector<8x128xi32>
    %30 = arith.cmpi eq, %3, %29 : vector<8x128xi32>
    %c1_i32 = arith.constant 1 : i32
    %31 = vector.broadcast %c1_i32 : i32 to vector<8x128xi32>
    %32 = arith.cmpi eq, %3, %31 : vector<8x128xi32>
    %c2_i32 = arith.constant 2 : i32
    %33 = vector.broadcast %c2_i32 : i32 to vector<8x128xi32>
    %34 = arith.cmpi eq, %3, %33 : vector<8x128xi32>
    %cst_11 = arith.constant 0.000000e+00 : f32
    %35 = vector.broadcast %cst_11 : f32 to vector<8x128xf32>
    %36 = arith.select %30, %5, %35 : vector<8x128xi1>, vector<8x128xf32>
    %37 = arith.select %32, %7, %36 : vector<8x128xi1>, vector<8x128xf32>
    %38 = arith.select %34, %9, %37 : vector<8x128xi1>, vector<8x128xf32>
    %39 = arith.addf %11, %20 : vector<8x128xf32>
    %40 = arith.subf %39, %38 : vector<8x128xf32>
    %c0_i32_12 = arith.constant 0 : i32
    %41 = vector.broadcast %c0_i32_12 : i32 to vector<8x128xi32>
    %42 = arith.cmpi sge, %3, %41 : vector<8x128xi32>
    %43 = arith.select %42, %40, %35 : vector<8x128xi1>, vector<8x128xf32>
    %44 = arith.andi %30, %25 : vector<8x128xi1>
    %cst_13 = arith.constant 1.000000e+00 : f32
    %cst_14 = arith.constant 0.000000e+00 : f32
    %45 = vector.broadcast %cst_13 : f32 to vector<8x128xf32>
    %46 = vector.broadcast %cst_14 : f32 to vector<8x128xf32>
    %47 = arith.select %44, %45, %46 : vector<8x128xi1>, vector<8x128xf32>
    %48 = arith.addf %35, %47 : vector<8x128xf32>
    %49 = arith.andi %30, %28 : vector<8x128xi1>
    %cst_15 = arith.constant 2.000000e+00 : f32
    %cst_16 = arith.constant 0.000000e+00 : f32
    %50 = vector.broadcast %cst_15 : f32 to vector<8x128xf32>
    %51 = vector.broadcast %cst_16 : f32 to vector<8x128xf32>
    %52 = arith.select %49, %50, %51 : vector<8x128xi1>, vector<8x128xf32>
    %53 = arith.addf %48, %52 : vector<8x128xf32>
    %54 = arith.andi %32, %21 : vector<8x128xi1>
    %cst_17 = arith.constant 5.000000e+00 : f32
    %cst_18 = arith.constant 0.000000e+00 : f32
    %55 = vector.broadcast %cst_17 : f32 to vector<8x128xf32>
    %56 = vector.broadcast %cst_18 : f32 to vector<8x128xf32>
    %57 = arith.select %54, %55, %56 : vector<8x128xi1>, vector<8x128xf32>
    %58 = arith.addf %53, %57 : vector<8x128xf32>
    %59 = arith.andi %32, %28 : vector<8x128xi1>
    %cst_19 = arith.constant 1.000000e+00 : f32
    %cst_20 = arith.constant 0.000000e+00 : f32
    %60 = vector.broadcast %cst_19 : f32 to vector<8x128xf32>
    %61 = vector.broadcast %cst_20 : f32 to vector<8x128xf32>
    %62 = arith.select %59, %60, %61 : vector<8x128xi1>, vector<8x128xf32>
    %63 = arith.addf %58, %62 : vector<8x128xf32>
    %64 = arith.andi %34, %21 : vector<8x128xi1>
    %cst_21 = arith.constant 2.000000e+01 : f32
    %cst_22 = arith.constant 0.000000e+00 : f32
    %65 = vector.broadcast %cst_21 : f32 to vector<8x128xf32>
    %66 = vector.broadcast %cst_22 : f32 to vector<8x128xf32>
    %67 = arith.select %64, %65, %66 : vector<8x128xi1>, vector<8x128xf32>
    %68 = arith.addf %63, %67 : vector<8x128xf32>
    %69 = arith.andi %34, %25 : vector<8x128xi1>
    %cst_23 = arith.constant 1.000000e+01 : f32
    %cst_24 = arith.constant 0.000000e+00 : f32
    %70 = vector.broadcast %cst_23 : f32 to vector<8x128xf32>
    %71 = vector.broadcast %cst_24 : f32 to vector<8x128xf32>
    %72 = arith.select %69, %70, %71 : vector<8x128xi1>, vector<8x128xf32>
    %73 = arith.addf %68, %72 : vector<8x128xf32>
    %cst_25 = arith.constant 1.000000e+00 : f32
    %cst_26 = arith.constant 0.000000e+00 : f32
    %74 = vector.broadcast %cst_25 : f32 to vector<8x128xf32>
    %75 = vector.broadcast %cst_26 : f32 to vector<8x128xf32>
    %76 = arith.select %34, %74, %75 : vector<8x128xi1>, vector<8x128xf32>
    %cst_27 = arith.constant dense<true> : vector<8x128xi1>
    %77 = arith.xori %28, %cst_27 : vector<8x128xi1>
    %78 = arith.andi %34, %77 : vector<8x128xi1>
    %cst_28 = arith.constant 1.000000e+00 : f32
    %cst_29 = arith.constant 0.000000e+00 : f32
    %79 = vector.broadcast %cst_28 : f32 to vector<8x128xf32>
    %80 = vector.broadcast %cst_29 : f32 to vector<8x128xf32>
    %81 = arith.select %78, %79, %80 : vector<8x128xi1>, vector<8x128xf32>
    %c0_30 = arith.constant 0 : index
    %c0_31 = arith.constant 0 : index
    %c0_32 = arith.constant 0 : index
    %82 = vector.load %arg5[%c0_30, %c0_31, %c0_32] : memref<5x8x128xf32, #tpu.memory_space<vmem>>, vector<1x8x128xf32>
    %83 = vector.shape_cast %82 : vector<1x8x128xf32> to vector<8x128xf32>
    %84 = vector.shape_cast %43 : vector<8x128xf32> to vector<1x8x128xf32>
    %cst_33 = arith.constant dense<0.000000e+00> : vector<8x128xf32>
    %85 = vector.multi_reduction <add>, %84, %cst_33 [0] : vector<1x8x128xf32> to vector<8x128xf32>
    %86 = arith.addf %83, %85 : vector<8x128xf32>
    %c0_34 = arith.constant 0 : index
    %c0_35 = arith.constant 0 : index
    %c0_36 = arith.constant 0 : index
    %87 = vector.load %arg5[%c0_34, %c0_35, %c0_36] : memref<5x8x128xf32, #tpu.memory_space<vmem>>, vector<1x8x128xf32>
    %88 = vector.shape_cast %87 : vector<1x8x128xf32> to vector<8x128xf32>
    %89 = vector.shape_cast %86 : vector<8x128xf32> to vector<1x8x128xf32>
    tpu.vector_store %arg5[%c0_34, %c0_35, %c0_36], %89 {strides = array<i32>} : memref<5x8x128xf32, #tpu.memory_space<vmem>>, vector<1x8x128xf32>,
    %c2_37 = arith.constant 2 : index
    %c0_38 = arith.constant 0 : index
    %c0_39 = arith.constant 0 : index
    %90 = vector.load %arg5[%c2_37, %c0_38, %c0_39] : memref<5x8x128xf32, #tpu.memory_space<vmem>>, vector<1x8x128xf32>
    %91 = vector.shape_cast %90 : vector<1x8x128xf32> to vector<8x128xf32>
    %92 = vector.shape_cast %73 : vector<8x128xf32> to vector<1x8x128xf32>
    %cst_40 = arith.constant dense<0.000000e+00> : vector<8x128xf32>
    %93 = vector.multi_reduction <add>, %92, %cst_40 [0] : vector<1x8x128xf32> to vector<8x128xf32>
    %94 = arith.addf %91, %93 : vector<8x128xf32>
    %c2_41 = arith.constant 2 : index
    %c0_42 = arith.constant 0 : index
    %c0_43 = arith.constant 0 : index
    %95 = vector.load %arg5[%c2_41, %c0_42, %c0_43] : memref<5x8x128xf32, #tpu.memory_space<vmem>>, vector<1x8x128xf32>
    %96 = vector.shape_cast %95 : vector<1x8x128xf32> to vector<8x128xf32>
    %97 = vector.shape_cast %94 : vector<8x128xf32> to vector<1x8x128xf32>
    tpu.vector_store %arg5[%c2_41, %c0_42, %c0_43], %97 {strides = array<i32>} : memref<5x8x128xf32, #tpu.memory_space<vmem>>, vector<1x8x128xf32>,
    %c3 = arith.constant 3 : index
    %c0_44 = arith.constant 0 : index
    %c0_45 = arith.constant 0 : index
    %98 = vector.load %arg5[%c3, %c0_44, %c0_45] : memref<5x8x128xf32, #tpu.memory_space<vmem>>, vector<1x8x128xf32>
    %99 = vector.shape_cast %98 : vector<1x8x128xf32> to vector<8x128xf32>
    %100 = vector.shape_cast %76 : vector<8x128xf32> to vector<1x8x128xf32>
    %cst_46 = arith.constant dense<0.000000e+00> : vector<8x128xf32>
    %101 = vector.multi_reduction <add>, %100, %cst_46 [0] : vector<1x8x128xf32> to vector<8x128xf32>
    %102 = arith.addf %99, %101 : vector<8x128xf32>
    %c3_47 = arith.constant 3 : index
    %c0_48 = arith.constant 0 : index
    %c0_49 = arith.constant 0 : index
    %103 = vector.load %arg5[%c3_47, %c0_48, %c0_49] : memref<5x8x128xf32, #tpu.memory_space<vmem>>, vector<1x8x128xf32>
    %104 = vector.shape_cast %103 : vector<1x8x128xf32> to vector<8x128xf32>
    %105 = vector.shape_cast %102 : vector<8x128xf32> to vector<1x8x128xf32>
    tpu.vector_store %arg5[%c3_47, %c0_48, %c0_49], %105 {strides = array<i32>} : memref<5x8x128xf32, #tpu.memory_space<vmem>>, vector<1x8x128xf32>,
    %c4 = arith.constant 4 : index
    %c0_50 = arith.constant 0 : index
    %c0_51 = arith.constant 0 : index
    %106 = vector.load %arg5[%c4, %c0_50, %c0_51] : memref<5x8x128xf32, #tpu.memory_space<vmem>>, vector<1x8x128xf32>
    %107 = vector.shape_cast %106 : vector<1x8x128xf32> to vector<8x128xf32>
    %108 = vector.shape_cast %81 : vector<8x128xf32> to vector<1x8x128xf32>
    %cst_52 = arith.constant dense<0.000000e+00> : vector<8x128xf32>
    %109 = vector.multi_reduction <add>, %108, %cst_52 [0] : vector<1x8x128xf32> to vector<8x128xf32>
    %110 = arith.addf %107, %109 : vector<8x128xf32>
    %c4_53 = arith.constant 4 : index
    %c0_54 = arith.constant 0 : index
    %c0_55 = arith.constant 0 : index
    %111 = vector.load %arg5[%c4_53, %c0_54, %c0_55] : memref<5x8x128xf32, #tpu.memory_space<vmem>>, vector<1x8x128xf32>
    %112 = vector.shape_cast %111 : vector<1x8x128xf32> to vector<8x128xf32>
    %113 = vector.shape_cast %110 : vector<8x128xf32> to vector<1x8x128xf32>
    tpu.vector_store %arg5[%c4_53, %c0_54, %c0_55], %113 {strides = array<i32>} : memref<5x8x128xf32, #tpu.memory_space<vmem>>, vector<1x8x128xf32>,
    %c0_i32_56 = arith.constant 0 : i32
    %114 = arith.cmpi eq, %arg1, %c0_i32_56 : i32
    %115 = arith.extui %114 : i1 to i32
    %c0_i32_57 = arith.constant 0 : i32
    %116 = arith.cmpi ne, %115, %c0_i32_57 : i32
    scf.if %116 {
      %c0_58 = arith.constant 0 : index
      %c0_59 = arith.constant 0 : index
      %c0_60 = arith.constant 0 : index
      %117 = vector.load %arg5[%c0_58, %c0_59, %c0_60] : memref<5x8x128xf32, #tpu.memory_space<vmem>>, vector<1x8x128xf32>
      %118 = vector.shape_cast %117 : vector<1x8x128xf32> to vector<8x128xf32>
      %119 = vector.shape_cast %118 : vector<8x128xf32> to vector<1x8x128xf32>
      %cst_61 = arith.constant dense<0.000000e+00> : vector<1xf32>
      %120 = vector.multi_reduction <add>, %119, %cst_61 [1, 2] : vector<1x8x128xf32> to vector<1xf32>
      %121 = vector.shape_cast %120 : vector<1xf32> to vector<1x1x1xf32>
      %122 = vector.extract %121[0, 0, 0] : f32 from vector<1x1x1xf32>
      %c0_62 = arith.constant 0 : index
      %c0_63 = arith.constant 0 : index
      %123 = memref.load %arg4[%c0_62, %c0_63] : memref<1x8xf32, #tpu.memory_space<smem>>
      memref.store %122, %arg4[%c0_62, %c0_63] : memref<1x8xf32, #tpu.memory_space<smem>>
      %c1_64 = arith.constant 1 : index
      %c0_65 = arith.constant 0 : index
      %c0_66 = arith.constant 0 : index
      %124 = vector.load %arg5[%c1_64, %c0_65, %c0_66] : memref<5x8x128xf32, #tpu.memory_space<vmem>>, vector<1x8x128xf32>
      %125 = vector.shape_cast %124 : vector<1x8x128xf32> to vector<8x128xf32>
      %126 = vector.shape_cast %125 : vector<8x128xf32> to vector<1x8x128xf32>
      %cst_67 = arith.constant dense<0.000000e+00> : vector<1xf32>
      %127 = vector.multi_reduction <add>, %126, %cst_67 [1, 2] : vector<1x8x128xf32> to vector<1xf32>
      %128 = vector.shape_cast %127 : vector<1xf32> to vector<1x1x1xf32>
      %129 = vector.extract %128[0, 0, 0] : f32 from vector<1x1x1xf32>
      %c0_68 = arith.constant 0 : index
      %c1_69 = arith.constant 1 : index
      %130 = memref.load %arg4[%c0_68, %c1_69] : memref<1x8xf32, #tpu.memory_space<smem>>
      memref.store %129, %arg4[%c0_68, %c1_69] : memref<1x8xf32, #tpu.memory_space<smem>>
      %c2_70 = arith.constant 2 : index
      %c0_71 = arith.constant 0 : index
      %c0_72 = arith.constant 0 : index
      %131 = vector.load %arg5[%c2_70, %c0_71, %c0_72] : memref<5x8x128xf32, #tpu.memory_space<vmem>>, vector<1x8x128xf32>
      %132 = vector.shape_cast %131 : vector<1x8x128xf32> to vector<8x128xf32>
      %133 = vector.shape_cast %132 : vector<8x128xf32> to vector<1x8x128xf32>
      %cst_73 = arith.constant dense<0.000000e+00> : vector<1xf32>
      %134 = vector.multi_reduction <add>, %133, %cst_73 [1, 2] : vector<1x8x128xf32> to vector<1xf32>
      %135 = vector.shape_cast %134 : vector<1xf32> to vector<1x1x1xf32>
      %136 = vector.extract %135[0, 0, 0] : f32 from vector<1x1x1xf32>
      %c0_74 = arith.constant 0 : index
      %c2_75 = arith.constant 2 : index
      %137 = memref.load %arg4[%c0_74, %c2_75] : memref<1x8xf32, #tpu.memory_space<smem>>
      memref.store %136, %arg4[%c0_74, %c2_75] : memref<1x8xf32, #tpu.memory_space<smem>>
      %c3_76 = arith.constant 3 : index
      %c0_77 = arith.constant 0 : index
      %c0_78 = arith.constant 0 : index
      %138 = vector.load %arg5[%c3_76, %c0_77, %c0_78] : memref<5x8x128xf32, #tpu.memory_space<vmem>>, vector<1x8x128xf32>
      %139 = vector.shape_cast %138 : vector<1x8x128xf32> to vector<8x128xf32>
      %140 = vector.shape_cast %139 : vector<8x128xf32> to vector<1x8x128xf32>
      %cst_79 = arith.constant dense<0.000000e+00> : vector<1xf32>
      %141 = vector.multi_reduction <add>, %140, %cst_79 [1, 2] : vector<1x8x128xf32> to vector<1xf32>
      %142 = vector.shape_cast %141 : vector<1xf32> to vector<1x1x1xf32>
      %143 = vector.extract %142[0, 0, 0] : f32 from vector<1x1x1xf32>
      %c0_80 = arith.constant 0 : index
      %c3_81 = arith.constant 3 : index
      %144 = memref.load %arg4[%c0_80, %c3_81] : memref<1x8xf32, #tpu.memory_space<smem>>
      memref.store %143, %arg4[%c0_80, %c3_81] : memref<1x8xf32, #tpu.memory_space<smem>>
      %c4_82 = arith.constant 4 : index
      %c0_83 = arith.constant 0 : index
      %c0_84 = arith.constant 0 : index
      %145 = vector.load %arg5[%c4_82, %c0_83, %c0_84] : memref<5x8x128xf32, #tpu.memory_space<vmem>>, vector<1x8x128xf32>
      %146 = vector.shape_cast %145 : vector<1x8x128xf32> to vector<8x128xf32>
      %147 = vector.shape_cast %146 : vector<8x128xf32> to vector<1x8x128xf32>
      %cst_85 = arith.constant dense<0.000000e+00> : vector<1xf32>
      %148 = vector.multi_reduction <add>, %147, %cst_85 [1, 2] : vector<1x8x128xf32> to vector<1xf32>
      %149 = vector.shape_cast %148 : vector<1xf32> to vector<1x1x1xf32>
      %150 = vector.extract %149[0, 0, 0] : f32 from vector<1x1x1xf32>
      %c0_86 = arith.constant 0 : index
      %c4_87 = arith.constant 4 : index
      %151 = memref.load %arg4[%c0_86, %c4_87] : memref<1x8xf32, #tpu.memory_space<smem>>
      memref.store %150, %arg4[%c0_86, %c4_87] : memref<1x8xf32, #tpu.memory_space<smem>>
      %cst_88 = arith.constant 0.000000e+00 : f32
      %c0_89 = arith.constant 0 : index
      %c5 = arith.constant 5 : index
      %152 = memref.load %arg4[%c0_89, %c5] : memref<1x8xf32, #tpu.memory_space<smem>>
      memref.store %cst_88, %arg4[%c0_89, %c5] : memref<1x8xf32, #tpu.memory_space<smem>>
      %cst_90 = arith.constant 0.000000e+00 : f32
      %c0_91 = arith.constant 0 : index
      %c6 = arith.constant 6 : index
      %153 = memref.load %arg4[%c0_91, %c6] : memref<1x8xf32, #tpu.memory_space<smem>>
      memref.store %cst_90, %arg4[%c0_91, %c6] : memref<1x8xf32, #tpu.memory_space<smem>>
      %cst_92 = arith.constant 0.000000e+00 : f32
      %c0_93 = arith.constant 0 : index
      %c7 = arith.constant 7 : index
      %154 = memref.load %arg4[%c0_93, %c7] : memref<1x8xf32, #tpu.memory_space<smem>>
      memref.store %cst_92, %arg4[%c0_93, %c7] : memref<1x8xf32, #tpu.memory_space<smem>>
    } else {
    }
    return
  }
  func.func @transform_0(%arg0: i32, %arg1: i32) -> (i32, i32, i32) {
    %c1_i32 = arith.constant 1 : i32
    %0 = arith.muli %arg0, %c1_i32 : i32
    %1 = arith.addi %0, %arg1 : i32
    %c0_i32 = arith.constant 0 : i32
    %c0_i32_0 = arith.constant 0 : i32
    %c0_i32_1 = arith.constant 0 : i32
    return %c0_i32, %1, %c0_i32_0 : i32, i32, i32
  }
  func.func @transform_1(%arg0: i32, %arg1: i32) -> (i32, i32) {
    %c1_i32 = arith.constant 1 : i32
    %0 = arith.muli %arg0, %c1_i32 : i32
    %1 = arith.addi %0, %arg1 : i32
    %c0_i32 = arith.constant 0 : i32
    %c0_i32_0 = arith.constant 0 : i32
    return %1, %c0_i32 : i32, i32
  }
  func.func @transform_2(%arg0: i32, %arg1: i32) -> (i32, i32) {
    %c0_i32 = arith.constant 0 : i32
    %c0_i32_0 = arith.constant 0 : i32
    return %arg0, %c0_i32 : i32, i32
  }
}

</mosaic_0001>

<bundles_post_ra>
// kernel: tpu_custom_call.1
= control target key start
LH: loop header
LB: loop body
LE: loop exit
PB: predicated region body
PF: predicated region fallthrough
CT: control target
= control target key end

     0   :  { %7 = vsyncpa [#allocation4], 0  ;;  %s410_s0 = inlined_call_operand.hbm [shape: f32[3,8,128], index: 0, kind: input, shape index: {}]   ;;  %s411_s1 = inlined_call_operand.hbm [shape: s32[8,128], index: 1, kind: input, shape index: {}]   ;;  %s412_s2 = inlined_call_operand.hbm [shape: f32[1,8], index: 2, kind: output, shape index: {}]  }
   0x1   :  { %8 = vsyncpa [#allocation7], 0 }
   0x2   :  { %9 = vsyncpa [#allocation5], 0  ;;  %s306_s9 = smov [#allocation3]   ;;  %s246_s13 = scalar_lea.hbm %s410_s0, 384 }
   0x3   :  { %s18_s10 = sshll.u32 %s306_s9, 4  ;;  %p247_p0 = scmp.ne.s32.totalorder %s410_s0, %s246_s13  ;;  %s19_s10 = int_to_ptr.vmem [resolvable:$true] %s18_s10 }
   0x4   :  { %p250_p1 = scmp.lt.u32.totalorder %s246_s13, %s410_s0 }
   0x6   :  { %p252_p2 = pnand %p250_p1, %p247_p0 }
   0x8   :  { %255 = shalt.err (!%p252_p2)
}
   0x9   :  { %s256_s18 = scalar_lea.vmem %s19_s10, 384  ;;  %p261_p4 = scmp.lt.s32.totalorder %s19_s10, %s19_s10 }
   0xa   :  { %p257_p3 = scmp.ne.s32.totalorder %s19_s10, %s256_s18  ;;  %p262_p5 = scmp.lt.s32.totalorder %s256_s18, %s256_s18 }
   0xc   :  { %p263_p6 = por %p262_p5, %p261_p4 }
   0xe   :  { %p264_p7 = pnand %p263_p6, %p257_p3 }
  0x10   :  { %267 = shalt.err (!%p264_p7)
}
  0x11   :  { %s307_s19 = smov 128   ;;  %s308_s20 = smov 8  }
  0x12   :  { %24 = dma.hbm_to_vmem [thread:$0]  %s410_s0, 384, %s19_s10, [#allocation4], %s307_s19, %s307_s19, %s308_s20  }
  0x13   :  { %s309_s23 = smov [#allocation6]   ;;  %s268_s27 = scalar_lea.hbm %s411_s1, 128 }
  0x14   :  { %s34_s24 = sshll.u32 %s309_s23, 4  ;;  %p269_p8 = scmp.ne.s32.totalorder %s411_s1, %s268_s27  ;;  %s35_s24 = int_to_ptr.vmem [resolvable:$true] %s34_s24 }
  0x15   :  { %p272_p9 = scmp.lt.u32.totalorder %s268_s27, %s411_s1 }
  0x17   :  { %p274_p10 = pnand %p272_p9, %p269_p8 }
  0x19   :  { %277 = shalt.err (!%p274_p10)
}
  0x1a   :  { %s278_s4 = scalar_lea.vmem %s35_s24, 128  ;;  %p283_p12 = scmp.lt.s32.totalorder %s35_s24, %s35_s24 }
  0x1b   :  { %p279_p11 = scmp.ne.s32.totalorder %s35_s24, %s278_s4  ;;  %p284_p13 = scmp.lt.s32.totalorder %s278_s4, %s278_s4 }
  0x1d   :  { %p285_p0 = por %p284_p13, %p283_p12 }
  0x1f   :  { %p286_p1 = pnand %p285_p0, %p279_p11 }
  0x21   :  { %289 = shalt.err (!%p286_p1)
}
  0x22   :  { %37 = dma.hbm_to_vmem [thread:$0]  %s411_s1, 128, %s35_s24, [#allocation7]  }
  0x23   :  { %300 = dma.done.wait [#allocation4], 384  }
  0x24   :  { %301 = vsyncadd [#allocation4], 4294966912 }
  0x25   :  { %302 = dma.done.wait [#allocation7], 128  }
  0x26   :  { %303 = vsyncadd [#allocation7], 4294967168  ;;  %v310_v0 = vmov 0.0   ;;  %v56_v1 = vld [vmem:[#allocation3] sm:$0xff]  ;;  %v58_v2 = vld [vmem:[#allocation3 + $0x8] sm:$0xff]  ;;  %vm311_vm2 = vmmov 1  }
  0x27   :  { %152 = vadd.xlane.f32.xlu0 %v310_v0  ;;  %v60_v3 = vld [vmem:[#allocation3 + $0x10] sm:$0xff]  ;;  %v61_v4 = vmax.f32 %v56_v1, %v58_v2  ;;  %v55_v6 = vld [vmem:[#allocation6] sm:$0xff]  ;;  %s312_s1 = smov 0.0   ;;  %s290_s13 = scalar_lea.hbm %s412_s2, 16 }
  0x28   :  { %vm84_vm7 = vcmp.eq.s32.totalorder %v55_v6, 0  ;;  %vm85_vm10 = vcmp.eq.s32.totalorder %v55_v6, 1  ;;  %vm86_vm12 = vcmp.eq.s32.totalorder %v55_v6, 2  ;;  %200 = sst [smem:[#allocation8 + $0x5]] %s312_s1  ;;  %p291_p2 = scmp.ne.s32.totalorder %s412_s2, %s290_s13 }
  0x29   :  { %v62_v5 = vmax.f32 %v61_v4, %v60_v3  ;;  %v112_v31 = vsel %vm86_vm12, 1.0, %v310_v0  ;;  %v87_v32 = vsel %vm84_vm7, %v56_v1, 0.0  ;;  %202 = sst [smem:[#allocation8 + $0x6]] %s312_s1  ;;  %p294_p3 = scmp.lt.u32.totalorder %s290_s13, %s412_s2 }
  0x2a   :  { %v88_v33 = vsel %vm85_vm10, %v58_v2, %v87_v32  ;;  %204 = sst [smem:[#allocation8 + $0x7]] %s312_s1 }
  0x2b   :  { %v63_v7 = vsub.f32 %v56_v1, %v62_v5  ;;  %v66_v8 = vsub.f32 %v58_v2, %v62_v5  ;;  %v70_v9 = vsub.f32 %v60_v3, %v62_v5  ;;  %vm76_vm0 = vcmp.eq.f32.partialorder %v56_v1, %v62_v5  ;;  %p296_p4 = pnand %p294_p3, %p291_p2 }
  0x2c   :  { %vm77_vm1 = vcmp.eq.f32.partialorder %v58_v2, %v62_v5  ;;  %vm79_vm3 = vmxor %vm76_vm0, %vm311_vm2  ;;  %vm78_vm4 = vcmp.eq.f32.partialorder %v60_v3, %v62_v5  ;;  %v89_v36 = vsel %vm86_vm12, %v60_v3, %v88_v33 }
  0x2d   :  { %v64_v10 = vmul.f32 1.442695, %v63_v7  ;;  %v67_v11 = vmul.f32 1.442695, %v66_v8  ;;  %v71_v12 = vmul.f32 1.442695, %v70_v9  ;;  %vm356_vm5 = vmand %vm77_vm1, %vm79_vm3 }
  0x2e   :  { %vm81_vm6 = vmor %vm76_vm0, %vm77_vm1 }
  0x2f   :  { %238 = vpow2.f32 %v64_v10  ;;  %vm82_vm8 = vmxor %vm81_vm6, %vm311_vm2 }
  0x30   :  { %240 = vpow2.f32 %v67_v11  ;;  %vm362_vm9 = vmand %vm78_vm4, %vm82_vm8  ;;  %vm92_vm4 = vcmp.ge.s32.totalorder %v55_v6, 0 }
  0x31   :  { %242 = vpow2.f32 %v71_v12  ;;  %vm94_vm11 = vmand %vm84_vm7, %vm356_vm5 }
  0x32   :  { %v95_v15 = vsel %vm94_vm11, 1.0, %v310_v0  ;;  %vm97_vm13 = vmand %vm84_vm7, %vm362_vm9 }
  0x33   :  { %v98_v16 = vsel %vm97_vm13, 2.0, %v310_v0  ;;  %vm100_vm14 = vmand %vm85_vm10, %vm76_vm0 }
  0x34   :  { %v99_v17 = vadd.f32 %v98_v16, %v95_v15  ;;  %v101_v18 = vsel %vm100_vm14, 5.0, %v310_v0  ;;  %vm103_vm15 = vmand %vm85_vm10, %vm362_vm9 }
  0x35   :  { %v104_v19 = vsel %vm103_vm15, 1.0, %v310_v0  ;;  %vm106_vm1 = vmand %vm86_vm12, %vm76_vm0 }
  0x36   :  { %v102_v20 = vadd.f32 %v101_v18, %v99_v17  ;;  %vm109_vm3 = vmand %vm86_vm12, %vm356_vm5  ;;  %v107_v21 = vsel %vm106_vm1, 20.0, %v310_v0 }
  0x37   :  { %v110_v24 = vsel %vm109_vm3, 10.0, %v310_v0  ;;  %vm113_vm0 = vmxor %vm362_vm9, %vm311_vm2 }
  0x38   :  { %v105_v22 = vadd.f32 %v104_v19, %v102_v20  ;;  %vm114_vm5 = vmand %vm86_vm12, %vm113_vm0 }
  0x39   :  { %v239_v23 = vpop.eup %238  ;;  %v115_v40 = vsel %vm114_vm5, 1.0, %v310_v0 }
  0x3a   :  { %v241_v25 = vpop.eup %240  ;;  %v108_v26 = vadd.f32 %v107_v21, %v105_v22 }
  0x3b   :  { %v243_v27 = vpop.eup %242  ;;  %v69_v28 = vadd.f32 %v241_v25, %v239_v23 }
  0x3c   :  { %v111_v29 = vadd.f32 %v110_v24, %v108_v26 }
  0x3d   :  { %v73_v30 = vadd.f32 %v243_v27, %v69_v28 }
  0x3e   :  { %164 = vadd.xlane.f32.xlu1 %v111_v29 }
  0x3f   :  { %244 = vlog2.f32 %v73_v30 }
  0x42   :  { %176 = vadd.xlane.f32.xlu1 %v112_v31 }
  0x49   :  { %v245_v34 = vpop.eup %244 }
  0x4a   :  { %v75_v35 = vmul.f32 0.6931472, %v245_v34 }
  0x4c   :  { %v90_v37 = vadd.f32 %v75_v35, %v62_v5 }
  0x4e   :  { %v91_v38 = vsub.f32 %v90_v37, %v89_v36 }
  0x50   :  { %v93_v39 = vsel %vm92_vm4, %v91_v38, 0.0 }
  0x51   :  { %139 = vadd.xlane.f32.xlu0 %v93_v39 }
  0x55   :  { %188 = vadd.xlane.f32.xlu0 %v115_v40 }
  0xb4   :  { %v153_v42 = vpop.xlane.xlu0 %152 }
  0xb5   :  { %v154_v44 = vrot.slane %v153_v42, 4 }
  0xb7   :  { %v155_v47 = vadd.f32 %v154_v44, %v153_v42 }
  0xb9   :  { %v156_v50 = vrot.slane %v155_v47, 2 }
  0xbb   :  { %v157_v57 = vadd.f32 %v156_v50, %v155_v47 }
  0xbd   :  { %v158_v0 = vrot.slane %v157_v57, 1 }
  0xbf   :  { %v159_v7 = vadd.f32 %v158_v0, %v157_v57 }
  0xcb   :  { %v165_v41 = vpop.xlane.xlu1 %164 }
  0xcc   :  { %v166_v45 = vrot.slane %v165_v41, 4 }
  0xce   :  { %v167_v48 = vadd.f32 %v166_v45, %v165_v41 }
  0xcf   :  { %v177_v43 = vpop.xlane.xlu1 %176 }
  0xd0   :  { %v178_v46 = vrot.slane %v177_v43, 4  ;;  %v168_v52 = vrot.slane %v167_v48, 2 }
  0xd2   :  { %v179_v49 = vadd.f32 %v178_v46, %v177_v43  ;;  %v169_v60 = vadd.f32 %v168_v52, %v167_v48 }
  0xd4   :  { %v180_v54 = vrot.slane %v179_v49, 2  ;;  %v170_v3 = vrot.slane %v169_v60, 1 }
  0xd6   :  { %v181_v61 = vadd.f32 %v180_v54, %v179_v49  ;;  %v171_v8 = vadd.f32 %v170_v3, %v169_v60 }
  0xd8   :  { %v182_v4 = vrot.slane %v181_v61, 1 }
  0xda   :  { %v183_v10 = vadd.f32 %v182_v4, %v181_v61 }
  0xde   :  { %v140_v51 = vpop.xlane.xlu0 %139 }
  0xdf   :  { %v141_v53 = vrot.slane %v140_v51, 4 }
  0xe1   :  { %v142_v55 = vadd.f32 %v141_v53, %v140_v51 }
  0xe2   :  { %v189_v56 = vpop.xlane.xlu0 %188 }
  0xe3   :  { %v143_v58 = vrot.slane %v142_v55, 2  ;;  %v190_v59 = vrot.slane %v189_v56, 4 }
  0xe5   :  { %v191_v62 = vadd.f32 %v190_v59, %v189_v56  ;;  %v144_v63 = vadd.f32 %v143_v58, %v142_v55 }
  0xe7   :  { %v192_v1 = vrot.slane %v191_v62, 2  ;;  %v145_v2 = vrot.slane %v144_v63, 1 }
  0xe9   :  { %v193_v5 = vadd.f32 %v192_v1, %v191_v62  ;;  %v146_v6 = vadd.f32 %v145_v2, %v144_v63 }
  0xeb   :  { %220 = vpush %v146_v6  ;;  %v194_v9 = vrot.slane %v193_v5, 1 }
  0xec   :  { %222 = vpush %v159_v7 }
  0xed   :  { %224 = vpush %v171_v8  ;;  %v195_v11 = vadd.f32 %v194_v9, %v193_v5 }
  0xee   :  { %226 = vpush %v183_v10 }
  0xef   :  { %228 = vpush %v195_v11 }
 0x11c   :  { %s221_s6 = spop %220 }
 0x11d   :  { %149 = sst [smem:[#allocation8]] %s221_s6  ;;  %s223_s7 = spop %222 }
 0x11e   :  { %162 = sst [smem:[#allocation8 + $0x1]] %s223_s7  ;;  %s225_s8 = spop %224 }
 0x11f   :  { %174 = sst [smem:[#allocation8 + $0x2]] %s225_s8  ;;  %s227_s9 = spop %226 }
 0x120   :  { %186 = sst [smem:[#allocation8 + $0x3]] %s227_s9  ;;  %s229_s10 = spop %228 }
 0x121   :  { %198 = sst [smem:[#allocation8 + $0x4]] %s229_s10 }
 0x122   :  { %299 = shalt.err (!%p296_p4)
}
 0x123   :  { %s313_s18 = smov [#allocation8]  }
 0x124   :  { %212 = dma.smem_to_hbm %s313_s18, 16, %s412_s2, [#allocation5]  }
 0x125   :  { %304 = dma.done.wait [#allocation5], 16  }
 0x126   :  { %305 = vsyncadd [#allocation5], 4294967280 }
 0x127   :  { %216 = sfence }
 0x128   :  { %217 = vsyncpa [#allocation4], 1 }
 0x129   :  { %218 = vsyncpa [#allocation7], 1 }
 0x12a   :  { %219 = vsyncpa [#allocation5], 1 }

</bundles_post_ra>
